<compile_context>
chip_gen: v5e
topology: v5e:2x2
jax: 0.10.0
libtpu: 0.0.40
codegen_flags: <defaults>
</compile_context>

<pallas_src>
import functools

import jax
import jax.numpy as jnp
from jax import lax
from jax.experimental import pallas as pl
from jax.experimental.pallas import tpu as pltpu


def _round_up(n, m):
    return ((n + m - 1) // m) * m


def _resident_spec(shape):
    """BlockSpec for an operand whose block index never changes (weight/bias).

    Single-buffered: halves the resident VMEM footprint vs the default
    double-buffer.  Falls back to the default if pipeline_mode is unavailable.
    """
    idx = lambda i: (0,) * len(shape)
    try:
        return pl.BlockSpec(shape, idx, pipeline_mode=pl.Buffered(1))
    except TypeError:  # older Pallas without pipeline_mode kwarg
        return pl.BlockSpec(shape, idx)


def _vmem_limit_bytes(working_set_bytes):
    """Sized VMEM budget: 2x working set, floored at 16 MiB, capped at 3/4 of
    physical VMEM (leaves headroom for Mosaic internal scratch/semaphores)."""
    try:
        phys = int(getattr(pltpu.get_tpu_info(), "vmem_capacity_bytes", 64 << 20))
    except Exception:
        phys = 64 << 20  # conservative default (v7x per-core VMEM)
    return int(min(max(2 * working_set_bytes, 16 << 20), phys * 3 // 4))


# ----------------------------------------------------------------------------
# Kernel 1: y is None  ->  softmax(linear(x), dim=1)
# ----------------------------------------------------------------------------
def _linear_softmax_kernel(x_ref, w_ref, b_ref, o_ref):
    # bf16 operands on the MXU, f32 accumulation; contract D of both operands
    # (x @ W^T) -- weight stays in its native nn.Linear (C, D) layout.
    logits = lax.dot_general(
        x_ref[...], w_ref[...],
        dimension_numbers=(((1,), (1,)), ((), ())),
        preferred_element_type=jnp.float32,
    ) + b_ref[...]
    m = jnp.max(logits, axis=1, keepdims=True)
    e = jnp.exp(logits - m)
    # exact divide: rows sum to 1 (the row reduction dominates cost anyway).
    o_ref[...] = e / jnp.sum(e, axis=1, keepdims=True)


# ----------------------------------------------------------------------------
# Kernel 2: y given  ->  per-row cross-entropy losses (reduced outside)
# ----------------------------------------------------------------------------
def _linear_ce_kernel(x_ref, w_ref, b_ref, y_ref, loss_ref, *,
                      num_rows, tile_rows):
    step = pl.program_id(0)
    logits = lax.dot_general(
        x_ref[...], w_ref[...],
        dimension_numbers=(((1,), (1,)), ((), ())),
        preferred_element_type=jnp.float32,
    ) + b_ref[...]
    tb, c = logits.shape

    # log-sum-exp per row
    m = jnp.max(logits, axis=1, keepdims=True)
    lse = m + jnp.log(jnp.sum(jnp.exp(logits - m), axis=1, keepdims=True))

    # gather-free pick of the target-class logit via a one-hot mask
    col = lax.broadcasted_iota(jnp.int32, (tb, c), 1)
    onehot = (col == y_ref[...]).astype(jnp.float32)          # y_ref: (TB, 1)
    picked = jnp.sum(logits * onehot, axis=1, keepdims=True)  # (TB, 1)

    # zero out batch-padding rows; each tile writes its own output block
    # (fully parallel across tiles -> megacore-friendly on v7x).
    row = step * tile_rows + lax.broadcasted_iota(jnp.int32, (tb, 1), 0)
    loss_ref[...] = jnp.where(row < num_rows, lse - picked, 0.0)


# ----------------------------------------------------------------------------
# Wrapper (mirror of TorchModel.forward)
# ----------------------------------------------------------------------------
def torch_model_forward(x, w, b, y=None):
    """x: (B, D) f32, w: (C, D) f32 (nn.Linear layout), b: (C,) f32,
    y: optional (B,) / (B, 1) int class indices."""
    B, D = x.shape
    C = w.shape[0]
    f32, bf16 = jnp.float32, jnp.bfloat16

    # bf16 MXU operands (f32 accumulate inside the kernel). Weight/bias casts
    # are tiny and static; callers holding bf16 weights can skip the cast.
    x_in = x.astype(bf16)
    w_in = w.astype(bf16)
    b_in = b.astype(f32).reshape(1, C)

    # Batch tiling: small batches -> one full-array tile, zero padding, grid=(1,).
    # Large batches -> 512-row tiles (multiple of 8) to amortize per-step
    # pipeline overhead; batch padded only up to the next tile multiple.
    MAX_TB = 512
    if B <= MAX_TB:
        TB, B_pad = B, B
    else:
        TB = MAX_TB
        B_pad = _round_up(B, TB)
    if B_pad != B:
        x_in = jnp.zeros((B_pad, D), bf16).at[:B].set(x_in)

    grid = (B_pad // TB,)
    x_spec = pl.BlockSpec((TB, D), lambda i: (i, 0))
    w_spec = _resident_spec((C, D))   # weight resident, single-buffered
    b_spec = _resident_spec((1, C))

    # VMEM working set: x tile x2, resident weight x1, bias, f32 out tile x2,
    # plus CE's small y / per-row-loss tiles.
    working = (2 * TB * D * 2 + C * D * 2 + 2 * C * 4
               + 2 * TB * C * 4 + 4 * TB * 4)
    vmem_limit = _vmem_limit_bytes(working)

    if y is None:
        probs = pl.pallas_call(
            _linear_softmax_kernel,
            out_shape=jax.ShapeDtypeStruct((B_pad, C), f32),
            grid_spec=pltpu.PrefetchScalarGridSpec(
                num_scalar_prefetch=0,
                grid=grid,
                in_specs=[x_spec, w_spec, b_spec],
                out_specs=pl.BlockSpec((TB, C), lambda i: (i, 0)),
            ),
            compiler_params=pltpu.CompilerParams(
                dimension_semantics=("parallel",),      # megacore on v7x
                vmem_limit_bytes=vmem_limit,
            ),
        )(x_in, w_in, b_in)
        return probs if B_pad == B else probs[:B]
    else:
        y_flat = jnp.reshape(y, (-1,)).astype(jnp.int32)        # y.squeeze()
        y_in = jnp.zeros((B_pad, 1), jnp.int32).at[:B, 0].set(y_flat)
        row_losses = pl.pallas_call(
            functools.partial(_linear_ce_kernel, num_rows=B, tile_rows=TB),
            out_shape=jax.ShapeDtypeStruct((B_pad, 1), f32),
            grid_spec=pltpu.PrefetchScalarGridSpec(
                num_scalar_prefetch=0,
                grid=grid,
                in_specs=[x_spec, w_spec, b_spec,
                          pl.BlockSpec((TB, 1), lambda i: (i, 0))],
                out_specs=pl.BlockSpec((TB, 1), lambda i: (i, 0)),
            ),
            compiler_params=pltpu.CompilerParams(
                dimension_semantics=("parallel",),      # no carried accumulator
                vmem_limit_bytes=vmem_limit,
            ),
        )(x_in, w_in, b_in, y_in)
        # tiny final reduction + mean outside the kernel (padding rows are 0).
        return jnp.sum(row_losses) * (1.0 / B)


# ----------------------------------------------------------------------------
# Pure-JAX reference for sanity checking
# ----------------------------------------------------------------------------
def _ref_forward(x, w, b, y=None):
    logits = x @ w.T + b
    if y is None:
        return jax.nn.softmax(logits, axis=1)
    logp = jax.nn.log_softmax(logits, axis=1)
    y = jnp.reshape(y, (-1,))
    return -jnp.mean(jnp.take_along_axis(logp, y[:, None], axis=1))


if __name__ == "__main__":
    # Shapes consistent with the module: input_size=32, 5 classes, batch=8.
    B, D, C = 8, 32, 5
    key = jax.random.PRNGKey(0)
    kx, kw, kb, ky = jax.random.split(key, 4)

    x = jax.random.normal(kx, (B, D), dtype=jnp.float32)
    w = jax.random.normal(kw, (C, D), dtype=jnp.float32) * 0.1   # nn.Linear weight (C, D)
    b = jax.random.normal(kb, (C,), dtype=jnp.float32) * 0.1     # nn.Linear bias (C,)
    y = jax.random.randint(ky, (B, 1), 0, C, dtype=jnp.int32)    # labels

    # Inference path: softmax probabilities
    probs = jax.block_until_ready(torch_model_forward(x, w, b))
    # Training path: cross-entropy loss
    loss = jax.block_until_ready(torch_model_forward(x, w, b, y))

    probs_ref = _ref_forward(x, w, b)
    loss_ref = _ref_forward(x, w, b, y)

    assert probs.shape == (B, C)
    # bf16 MXU operands -> ~1e-3 level error on logits; f32 everywhere else.
    assert jnp.allclose(probs, probs_ref, atol=1e-2), "softmax mismatch"
    assert jnp.allclose(loss, loss_ref, atol=1e-2, rtol=1e-2), "cross-entropy mismatch"

    print("KERNEL_OK")
</pallas_src>

<mosaic_0001>
module attributes {stable_mosaic.version = 11 : i64} {
  func.func @_linear_softmax_kernel(%arg0: i32, %arg1: memref<8x32xbf16, #tpu.memory_space<vmem>>, %arg2: memref<5x32xbf16, #tpu.memory_space<vmem>>, %arg3: memref<1x5xf32, #tpu.memory_space<vmem>>, %arg4: memref<8x5xf32, #tpu.memory_space<vmem>>) attributes {dimension_semantics = [#tpu.dimension_semantics<parallel>], iteration_bounds = array<i64: 1>, scalar_prefetch = 0 : i64, scratch_operands = 0 : i64, tpu.core_type = #tpu.core_type<tc>, window_params = [{transform_indices = @transform_0, window_bounds = array<i64: 8, 32>}, {pipeline_mode = #tpu.pipeline_mode<synchronous>, transform_indices = @transform_1, window_bounds = array<i64: 5, 32>}, {pipeline_mode = #tpu.pipeline_mode<synchronous>, transform_indices = @transform_2, window_bounds = array<i64: 1, 5>}, {transform_indices = @transform_3, window_bounds = array<i64: 8, 5>}]} {
    %c0 = arith.constant 0 : index
    %c0_0 = arith.constant 0 : index
    %0 = vector.load %arg1[%c0, %c0_0] : memref<8x32xbf16, #tpu.memory_space<vmem>>, vector<8x32xbf16>
    %c0_1 = arith.constant 0 : index
    %c0_2 = arith.constant 0 : index
    %1 = vector.load %arg2[%c0_1, %c0_2] : memref<5x32xbf16, #tpu.memory_space<vmem>>, vector<5x32xbf16>
    %cst = arith.constant dense<0.000000e+00> : vector<8x5xf32>
    %2 = tpu.matmul %0, %1, %cst {dimension_numbers = #tpu.dot_dimension_numbers<[1], [1], [0], [0], [0, 0, 1, 0], [], []>} : vector<8x32xbf16>, vector<5x32xbf16>, vector<8x5xf32> -> vector<8x5xf32>
    %c0_3 = arith.constant 0 : index
    %c0_4 = arith.constant 0 : index
    %3 = vector.load %arg3[%c0_3, %c0_4] : memref<1x5xf32, #tpu.memory_space<vmem>>, vector<1x5xf32>
    %4 = vector.broadcast %3 : vector<1x5xf32> to vector<8x5xf32>
    %5 = arith.addf %2, %4 : vector<8x5xf32>
    %cst_5 = arith.constant dense<0xFF800000> : vector<8xf32>
    %6 = vector.multi_reduction <maximumf>, %5, %cst_5 [1] : vector<8x5xf32> to vector<8xf32>
    %7 = vector.shape_cast %6 : vector<8xf32> to vector<8x1xf32>
    %8 = vector.broadcast %7 : vector<8x1xf32> to vector<8x5xf32>
    %9 = arith.subf %5, %8 : vector<8x5xf32>
    %10 = math.exp %9 : vector<8x5xf32>
    %cst_6 = arith.constant dense<0.000000e+00> : vector<8xf32>
    %11 = vector.multi_reduction <add>, %10, %cst_6 [1] : vector<8x5xf32> to vector<8xf32>
    %12 = vector.shape_cast %11 : vector<8xf32> to vector<8x1xf32>
    %13 = vector.broadcast %12 : vector<8x1xf32> to vector<8x5xf32>
    %14 = arith.divf %10, %13 : vector<8x5xf32>
    %c0_7 = arith.constant 0 : index
    %c0_8 = arith.constant 0 : index
    %15 = vector.load %arg4[%c0_7, %c0_8] : memref<8x5xf32, #tpu.memory_space<vmem>>, vector<8x5xf32>
    tpu.vector_store %arg4[%c0_7, %c0_8], %14 {strides = array<i32>} : memref<8x5xf32, #tpu.memory_space<vmem>>, vector<8x5xf32>,
    return
  }
  func.func @transform_0(%arg0: i32) -> (i32, i32) {
    %c0_i32 = arith.constant 0 : i32
    %c0_i32_0 = arith.constant 0 : i32
    return %arg0, %c0_i32 : i32, i32
  }
  func.func @transform_1(%arg0: i32) -> (i32, i32) {
    %c0_i32 = arith.constant 0 : i32
    %c0_i32_0 = arith.constant 0 : i32
    %c0_i32_1 = arith.constant 0 : i32
    return %c0_i32, %c0_i32_0 : i32, i32
  }
  func.func @transform_2(%arg0: i32) -> (i32, i32) {
    %c0_i32 = arith.constant 0 : i32
    %c0_i32_0 = arith.constant 0 : i32
    %c0_i32_1 = arith.constant 0 : i32
    return %c0_i32, %c0_i32_0 : i32, i32
  }
  func.func @transform_3(%arg0: i32) -> (i32, i32) {
    %c0_i32 = arith.constant 0 : i32
    %c0_i32_0 = arith.constant 0 : i32
    return %arg0, %c0_i32 : i32, i32
  }
}

</mosaic_0001>

<bundles_post_ra>
// kernel: tpu_custom_call.1
= control target key start
LH: loop header
LB: loop body
LE: loop exit
PB: predicated region body
PF: predicated region fallthrough
CT: control target
= control target key end

     0   :  { %8 = vsyncpa [#allocation3], 0  ;;  %s239_s0 = inlined_call_operand.hbm [shape: bf16[8,32], index: 0, kind: input, shape index: {}]   ;;  %s240_s1 = inlined_call_operand.hbm [shape: bf16[5,32], index: 1, kind: input, shape index: {}]   ;;  %s241_s2 = inlined_call_operand.vmem [shape: f32[1,5], index: 2, kind: input, shape index: {}]   ;;  %s242_s3 = inlined_call_operand.hbm [shape: f32[8,5], index: 3, kind: output, shape index: {}]  }
   0x1   :  { %9 = vsyncpa [#allocation6], 0 }
   0x2   :  { %10 = vsyncpa [#allocation4], 0  ;;  %s16_s14 = sshll.u32 %s239_s0, 4  ;;  %s201_s15 = smov [#allocation2]   ;;  %s17_s14 = int_to_ptr.hbm [resolvable:$true] %s16_s14 }
   0x3   :  { %s18_s16 = sshll.u32 %s201_s15, 4  ;;  %s27_s19 = sshll.u32 %s240_s1, 4  ;;  %s19_s16 = int_to_ptr.vmem [resolvable:$true] %s18_s16  ;;  %s28_s19 = int_to_ptr.hbm [resolvable:$true] %s27_s19 }
   0x4   :  { %21 = dma.hbm_to_vmem [thread:$0]  %s17_s14, 64, %s19_s16, [#allocation3]  }
   0x5   :  { %s202_s20 = smov [#allocation5]  }
   0x6   :  { %s29_s21 = sshll.u32 %s202_s20, 4  ;;  %s30_s21 = int_to_ptr.vmem [resolvable:$true] %s29_s21 }
   0x7   :  { %32 = dma.hbm_to_vmem [thread:$0]  %s28_s19, 64, %s30_s21, [#allocation6]  }
   0x8   :  { %195 = dma.done.wait [#allocation3], 64  }
   0x9   :  { %196 = vsyncadd [#allocation3], 4294967232 }
   0xa   :  { %197 = dma.done.wait [#allocation6], 64  }
   0xb   :  { %198 = vsyncadd [#allocation6], 4294967232  ;;  %vm50_vm0 = vcmask 261120   ;;  %v45_v0 = vld [vmem:[#allocation5] sm:$0x7]  ;;  %vm70_vm1 = vcmask 39936  }
   0xc   :  { %v55_v1 = vsel %vm50_vm0, %v45_v0, 0  ;;  %v44_v2 = vld [vmem:[#allocation2] sm:$0xf]  ;;  %s203_s1 = smov [#allocation7]   ;;  %s103_s25 = sshll.u32 %s242_s3, 4  ;;  %s104_s25 = int_to_ptr.hbm [resolvable:$true] %s103_s25 }
   0xd   :  { %64 = vmatpush.bf16.xpose.msra.mxu0 %v55_v1  ;;  %v118_v3 = vld [vmem:[%s241_s2] ss:$0 sm:$0xff]  ;;  %s101_s2 = sshll.u32 %s203_s1, 4  ;;  %s102_s2 = int_to_ptr.vmem [resolvable:$true] %s101_s2 }
  0x14   :  { %114 = vmatmul.msk.bf16.vlgmr.msra.gmra.mxu0 %vm50_vm0, %v44_v2 }
  0x91   :  { %v66_v4 = vpop.f32.mrf.mxu0 }
  0x92   :  { %v67_v5 = vadd.f32 %v118_v3, %v66_v4 }
  0x94   :  { %v71_v6 = vsel %vm70_vm1, %v67_v5, -inf }
  0x95   :  { %72 = vmax.xlane.f32.xlu0 %v71_v6 }
  0x99   :  { %v68_v7 = vpop.f32.mrf.mxu0 }
 0x108   :  { %v73_v8 = vpop.xlane.xlu0 %72 }
 0x109   :  { %v74_v9 = vsub.f32 %v67_v5, %v73_v8 }
 0x10b   :  { %v75_v10 = vmul.f32 1.442695, %v74_v9 }
 0x10d   :  { %119 = vpow2.f32 %v75_v10 }
 0x113   :  { %v120_v11 = vpop.eup %119 }
 0x114   :  { %v77_v12 = vsel %vm70_vm1, %v120_v11, 0.0 }
 0x115   :  { %78 = vadd.xlane.f32.xlu0 %v77_v12 }
 0x188   :  { %v79_v13 = vpop.xlane.xlu0 %78 }
 0x189   :  { %121 = vrcp.f32 %v79_v13  ;;  %v91_v17 = vand.u32 2147483648, %v79_v13  ;;  %v89_v19 = vand.u32 2147483647, %v79_v13  ;;  %vm85_vm3 = vweird.f32 %v79_v13 }
 0x18b   :  { %v92_v21 = vor.u32 1.1754944e-38, %v91_v17  ;;  %vm90_vm5 = vcmp.eq.f32.partialorder %v89_v19, 8.507059e+37 }
 0x18f   :  { %v122_v14 = vpop.eup %121 }
 0x190   :  { %v81_v15 = vmul.f32 %v122_v14, %v79_v13  ;;  %vm86_vm2 = vweird.f32 %v122_v14 }
 0x191   :  { %vm87_vm4 = vmor %vm85_vm3, %vm86_vm2 }
 0x192   :  { %v82_v16 = vsub.f32 1.0, %v81_v15 }
 0x194   :  { %v83_v18 = vmul.f32 %v122_v14, %v82_v16 }
 0x196   :  { %v84_v20 = vadd.f32 %v122_v14, %v83_v18 }
 0x198   :  { %v88_v22 = vsel %vm87_vm4, %v122_v14, %v84_v20 }
 0x199   :  { %v93_v23 = vsel %vm90_vm5, %v92_v21, %v88_v22 }
 0x19a   :  { %v94_v24 = vmul.f32 %v120_v11, %v93_v23 }
 0x19c   :  { %95 = vst.msk [vmem:[#allocation7] sm:$0xff] %vm70_vm1, %v94_v24 }
 0x19d   :  { %106 = dma.vmem_to_hbm [thread:$0]  %s102_s2, 128, %s104_s25, [#allocation4]  }
 0x19e   :  { %199 = dma.done.wait [#allocation4], 128  }
 0x19f   :  { %200 = vsyncadd [#allocation4], 4294967168 }
 0x1a0   :  { %111 = vsyncpa [#allocation3], 1 }
 0x1a1   :  { %112 = vsyncpa [#allocation6], 1 }
 0x1a2   :  { %113 = vsyncpa [#allocation4], 1 }

</bundles_post_ra>
